<compile_context>
chip_gen: v6e
topology: v6e:2x2x1
jax: 0.10.0
libtpu: 0.0.40
codegen_flags: <defaults>
</compile_context>

<pallas_src>
import jax
import jax.numpy as jnp
from jax.experimental import pallas as pl
from jax.experimental.pallas import tpu as pltpu

# ----------------------------- sizes (small) ---------------------------------
B        = 8      # batch (also the per-grid-step batch tile BM below)
C_IN     = 4      # image channels
H = W    = 16     # spatial
FEAT_DIM = 128    # stand-in for ResNet50 output_num() (2048)
BOTTLE   = 256    # bottleneck_dim
WIDTH    = 256    # width
NCLASS   = 31     # class_num
LANE_PAD = 128    # lane-dense padding for the small (31 / 1 wide) outputs
BN_EPS   = 1e-5
NEG_BIG  = -1e30  # padded-class logit bias -> exp underflows to exactly 0

BM = B            # batch tile per grid step (== B at this toy size)


# ------------------------- fused TCLNet forward kernel ------------------------
def tcl_fused_kernel(x_ref, ws_ref, bs_ref, wb_ref, bb_ref,
                     wcat_ref, bcat_ref, wc2_ref, bc2_ref, wa2_ref, ba2_ref,
                     feat_ref, logits_ref, softmax_ref, adv_ref):
    # --- backbone stub: global average pool (1/(H*W) folded into ws) + Linear + ReLU
    x = x_ref[...]                                             # (BM, C_IN, H*W) f32
    pooled = jnp.sum(x, axis=2)                                # lane-axis reduce -> (BM, C_IN)
    f = jnp.dot(pooled.astype(jnp.bfloat16), ws_ref[...],
                preferred_element_type=jnp.float32) + bs_ref[...]
    f = jnp.maximum(f, 0.0)                                    # (BM, FEAT_DIM)

    # --- bottleneck_layer: Linear (BN folded in) -> ReLU -> Dropout(identity)
    z = jnp.dot(f.astype(jnp.bfloat16), wb_ref[...],
                preferred_element_type=jnp.float32) + bb_ref[...]
    feat = jnp.maximum(z, 0.0)                                 # (BM, BOTTLE)
    feat_ref[...] = feat

    # --- grl_layer forward == identity; both heads share LHS `feat`,
    #     so their first Linears are fused into one (BOTTLE, 2*WIDTH) matmul.
    h_all = jnp.dot(feat.astype(jnp.bfloat16), wcat_ref[...],
                    preferred_element_type=jnp.float32) + bcat_ref[...]
    h_all = jnp.maximum(h_all, 0.0)                            # (BM, 2*WIDTH)
    h  = h_all[:, :WIDTH].astype(jnp.bfloat16)                 # classifier head
    ha = h_all[:, WIDTH:].astype(jnp.bfloat16)                 # adversarial head

    # --- classifier_layer final Linear (lane-padded to 128; pad bias = -1e30)
    logits = jnp.dot(h, wc2_ref[...],
                     preferred_element_type=jnp.float32) + bc2_ref[...]
    logits_ref[...] = logits                                   # (BM, 128)

    # --- softmax(dim=1): pad columns carry -1e30 -> exp == 0 -> ignored
    m = jnp.max(logits, axis=1, keepdims=True)
    e = jnp.exp(logits - m)
    denom = jnp.sum(e, axis=1, keepdims=True)
    softmax_ref[...] = e * pl.reciprocal(denom, approx=True)

    # --- classifier_layer_2 final Linear + sigmoid (lane-padded to 128)
    la = jnp.dot(ha, wa2_ref[...],
                 preferred_element_type=jnp.float32) + ba2_ref[...]
    # numerically stable sigmoid with EUP reciprocal (no overflow for la << 0)
    ea = jnp.exp(-jnp.abs(la))
    sig_pos = pl.reciprocal(1.0 + ea, approx=True)
    adv_ref[...] = jnp.where(la >= 0.0, sig_pos, ea * sig_pos)  # (BM, 128)


def _cost_estimate():
    mac = (C_IN * FEAT_DIM + FEAT_DIM * BOTTLE
           + BOTTLE * 2 * WIDTH + 2 * WIDTH * LANE_PAD)
    weight_elems = mac  # same products define weight sizes
    flops = 2 * B * mac
    transcendentals = B * 2 * LANE_PAD                        # softmax exp + sigmoid exp
    bytes_accessed = (B * C_IN * H * W * 4                    # input image
                      + weight_elems * 2                      # bf16 weights
                      + (FEAT_DIM + BOTTLE + 2 * WIDTH + 2 * LANE_PAD) * 4  # f32 biases
                      + B * (BOTTLE + 3 * LANE_PAD) * 4)      # outputs
    return pl.CostEstimate(flops=flops,
                           transcendentals=transcendentals,
                           bytes_accessed=bytes_accessed)


def tclnet_forward(x_nchw, params):
    xb = x_nchw.reshape(B, C_IN, H * W)
    grid = (B // BM,)

    # batch-tiled activations; weights' index_maps ignore the grid index
    act_in   = pl.BlockSpec((BM, C_IN, H * W), lambda i: (i, 0, 0))
    w_spec   = lambda shp: pl.BlockSpec(shp, lambda i: (0, 0))
    out_spec = lambda n: pl.BlockSpec((BM, n), lambda i: (i, 0))

    in_specs = [
        act_in,
        w_spec((C_IN, FEAT_DIM)),   w_spec((1, FEAT_DIM)),      # stub
        w_spec((FEAT_DIM, BOTTLE)), w_spec((1, BOTTLE)),        # bottleneck (BN folded)
        w_spec((BOTTLE, 2 * WIDTH)), w_spec((1, 2 * WIDTH)),    # concat head-1 Linears
        w_spec((WIDTH, LANE_PAD)),  w_spec((1, LANE_PAD)),      # classifier final
        w_spec((WIDTH, LANE_PAD)),  w_spec((1, LANE_PAD)),      # adversarial final
    ]
    out_specs = (out_spec(BOTTLE), out_spec(LANE_PAD),
                 out_spec(LANE_PAD), out_spec(LANE_PAD))
    out_shapes = (
        jax.ShapeDtypeStruct((B, BOTTLE),   jnp.float32),   # features
        jax.ShapeDtypeStruct((B, LANE_PAD), jnp.float32),   # logits (padded)
        jax.ShapeDtypeStruct((B, LANE_PAD), jnp.float32),   # softmax (padded)
        jax.ShapeDtypeStruct((B, LANE_PAD), jnp.float32),   # sigmoid adv (padded)
    )

    feat, logits_pad, softmax_pad, adv_pad = pl.pallas_call(
        tcl_fused_kernel,
        out_shape=out_shapes,
        grid=grid,
        in_specs=in_specs,
        out_specs=out_specs,
        compiler_params=pltpu.CompilerParams(
            dimension_semantics=("parallel",)),   # v7x: shard batch tiles over both TCs
        cost_estimate=_cost_estimate(),
    )(xb,
      params["w_stub"], params["b_stub"],
      params["wb"], params["bb"],
      params["wcat"], params["bcat"],
      params["wc2p"], params["bc2p"],
      params["wa2p"], params["ba2p"])

    features        = feat
    outputs         = logits_pad[:, :NCLASS]
    softmax_outputs = softmax_pad[:, :NCLASS]
    outputs_adv     = adv_pad[:, :1]
    return features, outputs, softmax_outputs, outputs_adv


# --------------------------- parameter initialization ------------------------
def init_params(key):
    ks = jax.random.split(key, 6)
    p = {}

    # backbone stub: deterministic synthetic weights; fold the 1/(H*W) of the
    # spatial mean into the weight so the kernel only does a lane-axis sum.
    w_stub = jax.random.normal(ks[0], (C_IN, FEAT_DIM), jnp.float32) * 0.05
    p["w_stub"] = (w_stub / float(H * W)).astype(jnp.bfloat16)
    p["b_stub"] = jnp.zeros((1, FEAT_DIM), jnp.float32)

    # bottleneck Linear: weight ~ N(0, 0.005), bias = 0.1 (stored (in, out)),
    # with eval-mode BatchNorm1d (gamma=1, beta=0, mean=0, var=1) folded in.
    wb = jax.random.normal(ks[1], (FEAT_DIM, BOTTLE), jnp.float32) * 0.005
    bb = jnp.full((1, BOTTLE), 0.1, jnp.float32)
    bn_scale = 1.0 / jnp.sqrt(1.0 + BN_EPS)          # gamma * rsqrt(var + eps)
    p["wb"] = (wb * bn_scale).astype(jnp.bfloat16)
    p["bb"] = (bb - 0.0) * bn_scale + 0.0            # (bb - mean)*scale + beta

    # first Linear of classifier_layer and classifier_layer_2, concatenated:
    # both are (256, 256), weight ~ N(0, 0.01), bias 0.
    wc1 = jax.random.normal(ks[2], (BOTTLE, WIDTH), jnp.float32) * 0.01
    wa1 = jax.random.normal(ks[3], (BOTTLE, WIDTH), jnp.float32) * 0.01
    p["wcat"] = jnp.concatenate([wc1, wa1], axis=1).astype(jnp.bfloat16)  # (256, 512)
    p["bcat"] = jnp.zeros((1, 2 * WIDTH), jnp.float32)

    # classifier final Linear(256, 31), lane-padded to 128 columns.
    wc2 = jax.random.normal(ks[4], (WIDTH, NCLASS), jnp.float32) * 0.01
    p["wc2p"] = jnp.pad(wc2, ((0, 0), (0, LANE_PAD - NCLASS))).astype(jnp.bfloat16)
    bc2p = jnp.full((1, LANE_PAD), NEG_BIG, jnp.float32)   # pad classes -> softmax 0
    p["bc2p"] = bc2p.at[:, :NCLASS].set(0.0)

    # adversarial final Linear(256, 1), lane-padded to 128 columns.
    wa2 = jax.random.normal(ks[5], (WIDTH, 1), jnp.float32) * 0.01
    p["wa2p"] = jnp.pad(wa2, ((0, 0), (0, LANE_PAD - 1))).astype(jnp.bfloat16)
    p["ba2p"] = jnp.zeros((1, LANE_PAD), jnp.float32)
    return p


# ------------------------------------ main ------------------------------------
if __name__ == "__main__":
    key = jax.random.PRNGKey(0)
    k_x, k_p = jax.random.split(key)
    x = jax.random.normal(k_x, (B, C_IN, H, W), jnp.float32)   # NCHW
    params = init_params(k_p)

    fwd = jax.jit(tclnet_forward)
    features, outputs, softmax_outputs, outputs_adv = fwd(x, params)
    jax.block_until_ready((features, outputs, softmax_outputs, outputs_adv))

    # light sanity checks
    assert features.shape == (B, BOTTLE)
    assert outputs.shape == (B, NCLASS)
    assert softmax_outputs.shape == (B, NCLASS)
    assert outputs_adv.shape == (B, 1)
    assert bool(jnp.all(jnp.isfinite(features)))
    assert bool(jnp.all(jnp.isfinite(outputs)))
    assert bool(jnp.all(jnp.isfinite(outputs_adv)))
    # approx-reciprocal softmax: sums to 1 within EUP approximation tolerance
    assert bool(jnp.allclose(jnp.sum(softmax_outputs, axis=1), 1.0, atol=1e-2))
    assert bool(jnp.all((outputs_adv >= 0.0) & (outputs_adv <= 1.0)))

    print("KERNEL_OK")
</pallas_src>

<mosaic_0001>
module attributes {stable_mosaic.version = 11 : i64} {
  func.func @tcl_fused_kernel(%arg0: i32, %arg1: memref<8x4x256xf32, #tpu.memory_space<vmem>>, %arg2: memref<4x128xbf16, #tpu.memory_space<vmem>>, %arg3: memref<1x128xf32, #tpu.memory_space<vmem>>, %arg4: memref<128x256xbf16, #tpu.memory_space<vmem>>, %arg5: memref<1x256xf32, #tpu.memory_space<vmem>>, %arg6: memref<256x512xbf16, #tpu.memory_space<vmem>>, %arg7: memref<1x512xf32, #tpu.memory_space<vmem>>, %arg8: memref<256x128xbf16, #tpu.memory_space<vmem>>, %arg9: memref<1x128xf32, #tpu.memory_space<vmem>>, %arg10: memref<256x128xbf16, #tpu.memory_space<vmem>>, %arg11: memref<1x128xf32, #tpu.memory_space<vmem>>, %arg12: memref<8x256xf32, #tpu.memory_space<vmem>>, %arg13: memref<8x128xf32, #tpu.memory_space<vmem>>, %arg14: memref<8x128xf32, #tpu.memory_space<vmem>>, %arg15: memref<8x128xf32, #tpu.memory_space<vmem>>) attributes {dimension_semantics = [#tpu.dimension_semantics<parallel>], iteration_bounds = array<i64: 1>, scalar_prefetch = 0 : i64, scratch_operands = 0 : i64, tpu.core_type = #tpu.core_type<tc>, window_params = [{transform_indices = @transform_0, window_bounds = array<i64: 8, 4, 256>}, {pipeline_mode = #tpu.pipeline_mode<synchronous>, transform_indices = @transform_1, window_bounds = array<i64: 4, 128>}, {pipeline_mode = #tpu.pipeline_mode<synchronous>, transform_indices = @transform_2, window_bounds = array<i64: 1, 128>}, {pipeline_mode = #tpu.pipeline_mode<synchronous>, transform_indices = @transform_3, window_bounds = array<i64: 128, 256>}, {pipeline_mode = #tpu.pipeline_mode<synchronous>, transform_indices = @transform_4, window_bounds = array<i64: 1, 256>}, {pipeline_mode = #tpu.pipeline_mode<synchronous>, transform_indices = @transform_5, window_bounds = array<i64: 256, 512>}, {pipeline_mode = #tpu.pipeline_mode<synchronous>, transform_indices = @transform_6, window_bounds = array<i64: 1, 512>}, {pipeline_mode = #tpu.pipeline_mode<synchronous>, transform_indices = @transform_7, window_bounds = array<i64: 256, 128>}, {pipeline_mode = #tpu.pipeline_mode<synchronous>, transform_indices = @transform_8, window_bounds = array<i64: 1, 128>}, {pipeline_mode = #tpu.pipeline_mode<synchronous>, transform_indices = @transform_9, window_bounds = array<i64: 256, 128>}, {pipeline_mode = #tpu.pipeline_mode<synchronous>, transform_indices = @transform_10, window_bounds = array<i64: 1, 128>}, {transform_indices = @transform_11, window_bounds = array<i64: 8, 256>}, {transform_indices = @transform_12, window_bounds = array<i64: 8, 128>}, {transform_indices = @transform_13, window_bounds = array<i64: 8, 128>}, {transform_indices = @transform_14, window_bounds = array<i64: 8, 128>}]} {
    %c0 = arith.constant 0 : index
    %c0_0 = arith.constant 0 : index
    %c0_1 = arith.constant 0 : index
    %0 = vector.load %arg1[%c0, %c0_0, %c0_1] : memref<8x4x256xf32, #tpu.memory_space<vmem>>, vector<8x4x256xf32>
    %cst = arith.constant dense<0.000000e+00> : vector<8x4xf32>
    %1 = vector.multi_reduction <add>, %0, %cst [2] : vector<8x4x256xf32> to vector<8x4xf32>
    %2 = arith.truncf %1 : vector<8x4xf32> to vector<8x4xbf16>
    %c0_2 = arith.constant 0 : index
    %c0_3 = arith.constant 0 : index
    %3 = vector.load %arg2[%c0_2, %c0_3] : memref<4x128xbf16, #tpu.memory_space<vmem>>, vector<4x128xbf16>
    %cst_4 = arith.constant dense<0.000000e+00> : vector<8x128xf32>
    %4 = tpu.matmul %2, %3, %cst_4 {dimension_numbers = #tpu.dot_dimension_numbers<[1], [0], [0], [1], [0, 0, 1, 1], [], []>} : vector<8x4xbf16>, vector<4x128xbf16>, vector<8x128xf32> -> vector<8x128xf32>
    %c0_5 = arith.constant 0 : index
    %c0_6 = arith.constant 0 : index
    %5 = vector.load %arg3[%c0_5, %c0_6] : memref<1x128xf32, #tpu.memory_space<vmem>>, vector<1x128xf32>
    %6 = vector.broadcast %5 : vector<1x128xf32> to vector<8x128xf32>
    %7 = arith.addf %4, %6 : vector<8x128xf32>
    %cst_7 = arith.constant 0.000000e+00 : f32
    %8 = vector.broadcast %cst_7 : f32 to vector<8x128xf32>
    %9 = arith.maximumf %7, %8 : vector<8x128xf32>
    %10 = arith.truncf %9 : vector<8x128xf32> to vector<8x128xbf16>
    %c0_8 = arith.constant 0 : index
    %c0_9 = arith.constant 0 : index
    %11 = vector.load %arg4[%c0_8, %c0_9] : memref<128x256xbf16, #tpu.memory_space<vmem>>, vector<128x256xbf16>
    %cst_10 = arith.constant dense<0.000000e+00> : vector<8x256xf32>
    %12 = tpu.matmul %10, %11, %cst_10 {dimension_numbers = #tpu.dot_dimension_numbers<[1], [0], [0], [1], [0, 0, 1, 1], [], []>} : vector<8x128xbf16>, vector<128x256xbf16>, vector<8x256xf32> -> vector<8x256xf32>
    %c0_11 = arith.constant 0 : index
    %c0_12 = arith.constant 0 : index
    %13 = vector.load %arg5[%c0_11, %c0_12] : memref<1x256xf32, #tpu.memory_space<vmem>>, vector<1x256xf32>
    %14 = vector.broadcast %13 : vector<1x256xf32> to vector<8x256xf32>
    %15 = arith.addf %12, %14 : vector<8x256xf32>
    %cst_13 = arith.constant 0.000000e+00 : f32
    %16 = vector.broadcast %cst_13 : f32 to vector<8x256xf32>
    %17 = arith.maximumf %15, %16 : vector<8x256xf32>
    %c0_14 = arith.constant 0 : index
    %c0_15 = arith.constant 0 : index
    %18 = vector.load %arg12[%c0_14, %c0_15] : memref<8x256xf32, #tpu.memory_space<vmem>>, vector<8x256xf32>
    tpu.vector_store %arg12[%c0_14, %c0_15], %17 {strides = array<i32>} : memref<8x256xf32, #tpu.memory_space<vmem>>, vector<8x256xf32>,
    %19 = arith.truncf %17 : vector<8x256xf32> to vector<8x256xbf16>
    %c0_16 = arith.constant 0 : index
    %c0_17 = arith.constant 0 : index
    %20 = vector.load %arg6[%c0_16, %c0_17] : memref<256x512xbf16, #tpu.memory_space<vmem>>, vector<256x512xbf16>
    %cst_18 = arith.constant dense<0.000000e+00> : vector<8x512xf32>
    %21 = tpu.matmul %19, %20, %cst_18 {dimension_numbers = #tpu.dot_dimension_numbers<[1], [0], [0], [1], [0, 0, 1, 1], [], []>} : vector<8x256xbf16>, vector<256x512xbf16>, vector<8x512xf32> -> vector<8x512xf32>
    %c0_19 = arith.constant 0 : index
    %c0_20 = arith.constant 0 : index
    %22 = vector.load %arg7[%c0_19, %c0_20] : memref<1x512xf32, #tpu.memory_space<vmem>>, vector<1x512xf32>
    %23 = vector.broadcast %22 : vector<1x512xf32> to vector<8x512xf32>
    %24 = arith.addf %21, %23 : vector<8x512xf32>
    %cst_21 = arith.constant 0.000000e+00 : f32
    %25 = vector.broadcast %cst_21 : f32 to vector<8x512xf32>
    %26 = arith.maximumf %24, %25 : vector<8x512xf32>
    %27 = vector.extract_strided_slice %26 {offsets = [0, 0], sizes = [8, 256], strides = [1, 1]} : vector<8x512xf32> to vector<8x256xf32>
    %28 = arith.truncf %27 : vector<8x256xf32> to vector<8x256xbf16>
    %29 = vector.extract_strided_slice %26 {offsets = [0, 256], sizes = [8, 256], strides = [1, 1]} : vector<8x512xf32> to vector<8x256xf32>
    %30 = arith.truncf %29 : vector<8x256xf32> to vector<8x256xbf16>
    %c0_22 = arith.constant 0 : index
    %c0_23 = arith.constant 0 : index
    %31 = vector.load %arg8[%c0_22, %c0_23] : memref<256x128xbf16, #tpu.memory_space<vmem>>, vector<256x128xbf16>
    %cst_24 = arith.constant dense<0.000000e+00> : vector<8x128xf32>
    %32 = tpu.matmul %28, %31, %cst_24 {dimension_numbers = #tpu.dot_dimension_numbers<[1], [0], [0], [1], [0, 0, 1, 1], [], []>} : vector<8x256xbf16>, vector<256x128xbf16>, vector<8x128xf32> -> vector<8x128xf32>
    %c0_25 = arith.constant 0 : index
    %c0_26 = arith.constant 0 : index
    %33 = vector.load %arg9[%c0_25, %c0_26] : memref<1x128xf32, #tpu.memory_space<vmem>>, vector<1x128xf32>
    %34 = vector.broadcast %33 : vector<1x128xf32> to vector<8x128xf32>
    %35 = arith.addf %32, %34 : vector<8x128xf32>
    %c0_27 = arith.constant 0 : index
    %c0_28 = arith.constant 0 : index
    %36 = vector.load %arg13[%c0_27, %c0_28] : memref<8x128xf32, #tpu.memory_space<vmem>>, vector<8x128xf32>
    tpu.vector_store %arg13[%c0_27, %c0_28], %35 {strides = array<i32>} : memref<8x128xf32, #tpu.memory_space<vmem>>, vector<8x128xf32>,
    %cst_29 = arith.constant dense<0xFF800000> : vector<8xf32>
    %37 = vector.multi_reduction <maximumf>, %35, %cst_29 [1] : vector<8x128xf32> to vector<8xf32>
    %38 = vector.shape_cast %37 : vector<8xf32> to vector<8x1xf32>
    %39 = vector.broadcast %38 : vector<8x1xf32> to vector<8x128xf32>
    %40 = arith.subf %35, %39 : vector<8x128xf32>
    %41 = math.exp %40 : vector<8x128xf32>
    %cst_30 = arith.constant dense<0.000000e+00> : vector<8xf32>
    %42 = vector.multi_reduction <add>, %41, %cst_30 [1] : vector<8x128xf32> to vector<8xf32>
    %43 = vector.shape_cast %42 : vector<8xf32> to vector<8x1xf32>
    %44 = tpu.reciprocal %43 {approx = true} : vector<8x1xf32> -> vector<8x1xf32>
    %45 = vector.broadcast %44 : vector<8x1xf32> to vector<8x128xf32>
    %46 = arith.mulf %41, %45 : vector<8x128xf32>
    %c0_31 = arith.constant 0 : index
    %c0_32 = arith.constant 0 : index
    %47 = vector.load %arg14[%c0_31, %c0_32] : memref<8x128xf32, #tpu.memory_space<vmem>>, vector<8x128xf32>
    tpu.vector_store %arg14[%c0_31, %c0_32], %46 {strides = array<i32>} : memref<8x128xf32, #tpu.memory_space<vmem>>, vector<8x128xf32>,
    %c0_33 = arith.constant 0 : index
    %c0_34 = arith.constant 0 : index
    %48 = vector.load %arg10[%c0_33, %c0_34] : memref<256x128xbf16, #tpu.memory_space<vmem>>, vector<256x128xbf16>
    %cst_35 = arith.constant dense<0.000000e+00> : vector<8x128xf32>
    %49 = tpu.matmul %30, %48, %cst_35 {dimension_numbers = #tpu.dot_dimension_numbers<[1], [0], [0], [1], [0, 0, 1, 1], [], []>} : vector<8x256xbf16>, vector<256x128xbf16>, vector<8x128xf32> -> vector<8x128xf32>
    %c0_36 = arith.constant 0 : index
    %c0_37 = arith.constant 0 : index
    %50 = vector.load %arg11[%c0_36, %c0_37] : memref<1x128xf32, #tpu.memory_space<vmem>>, vector<1x128xf32>
    %51 = vector.broadcast %50 : vector<1x128xf32> to vector<8x128xf32>
    %52 = arith.addf %49, %51 : vector<8x128xf32>
    %53 = math.absf %52 : vector<8x128xf32>
    %cst_38 = arith.constant 0.000000e+00 : f32
    %54 = vector.broadcast %cst_38 : f32 to vector<8x128xf32>
    %55 = arith.subf %54, %53 : vector<8x128xf32>
    %56 = math.exp %55 : vector<8x128xf32>
    %cst_39 = arith.constant 1.000000e+00 : f32
    %57 = vector.broadcast %cst_39 : f32 to vector<8x128xf32>
    %58 = arith.addf %57, %56 : vector<8x128xf32>
    %59 = tpu.reciprocal %58 {approx = true} : vector<8x128xf32> -> vector<8x128xf32>
    %cst_40 = arith.constant 0.000000e+00 : f32
    %60 = vector.broadcast %cst_40 : f32 to vector<8x128xf32>
    %61 = arith.cmpf oge, %52, %60 : vector<8x128xf32>
    %62 = arith.mulf %56, %59 : vector<8x128xf32>
    %63 = arith.select %61, %59, %62 : vector<8x128xi1>, vector<8x128xf32>
    %c0_41 = arith.constant 0 : index
    %c0_42 = arith.constant 0 : index
    %64 = vector.load %arg15[%c0_41, %c0_42] : memref<8x128xf32, #tpu.memory_space<vmem>>, vector<8x128xf32>
    tpu.vector_store %arg15[%c0_41, %c0_42], %63 {strides = array<i32>} : memref<8x128xf32, #tpu.memory_space<vmem>>, vector<8x128xf32>,
    return
  }
  func.func @transform_0(%arg0: i32) -> (i32, i32, i32) {
    %c0_i32 = arith.constant 0 : i32
    %c0_i32_0 = arith.constant 0 : i32
    %c0_i32_1 = arith.constant 0 : i32
    return %arg0, %c0_i32, %c0_i32_0 : i32, i32, i32
  }
  func.func @transform_1(%arg0: i32) -> (i32, i32) {
    %c0_i32 = arith.constant 0 : i32
    %c0_i32_0 = arith.constant 0 : i32
    %c0_i32_1 = arith.constant 0 : i32
    return %c0_i32, %c0_i32_0 : i32, i32
  }
  func.func @transform_2(%arg0: i32) -> (i32, i32) {
    %c0_i32 = arith.constant 0 : i32
    %c0_i32_0 = arith.constant 0 : i32
    %c0_i32_1 = arith.constant 0 : i32
    return %c0_i32, %c0_i32_0 : i32, i32
  }
  func.func @transform_3(%arg0: i32) -> (i32, i32) {
    %c0_i32 = arith.constant 0 : i32
    %c0_i32_0 = arith.constant 0 : i32
    %c0_i32_1 = arith.constant 0 : i32
    return %c0_i32, %c0_i32_0 : i32, i32
  }
  func.func @transform_4(%arg0: i32) -> (i32, i32) {
    %c0_i32 = arith.constant 0 : i32
    %c0_i32_0 = arith.constant 0 : i32
    %c0_i32_1 = arith.constant 0 : i32
    return %c0_i32, %c0_i32_0 : i32, i32
  }
  func.func @transform_5(%arg0: i32) -> (i32, i32) {
    %c0_i32 = arith.constant 0 : i32
    %c0_i32_0 = arith.constant 0 : i32
    %c0_i32_1 = arith.constant 0 : i32
    return %c0_i32, %c0_i32_0 : i32, i32
  }
  func.func @transform_6(%arg0: i32) -> (i32, i32) {
    %c0_i32 = arith.constant 0 : i32
    %c0_i32_0 = arith.constant 0 : i32
    %c0_i32_1 = arith.constant 0 : i32
    return %c0_i32, %c0_i32_0 : i32, i32
  }
  func.func @transform_7(%arg0: i32) -> (i32, i32) {
    %c0_i32 = arith.constant 0 : i32
    %c0_i32_0 = arith.constant 0 : i32
    %c0_i32_1 = arith.constant 0 : i32
    return %c0_i32, %c0_i32_0 : i32, i32
  }
  func.func @transform_8(%arg0: i32) -> (i32, i32) {
    %c0_i32 = arith.constant 0 : i32
    %c0_i32_0 = arith.constant 0 : i32
    %c0_i32_1 = arith.constant 0 : i32
    return %c0_i32, %c0_i32_0 : i32, i32
  }
  func.func @transform_9(%arg0: i32) -> (i32, i32) {
    %c0_i32 = arith.constant 0 : i32
    %c0_i32_0 = arith.constant 0 : i32
    %c0_i32_1 = arith.constant 0 : i32
    return %c0_i32, %c0_i32_0 : i32, i32
  }
  func.func @transform_10(%arg0: i32) -> (i32, i32) {
    %c0_i32 = arith.constant 0 : i32
    %c0_i32_0 = arith.constant 0 : i32
    %c0_i32_1 = arith.constant 0 : i32
    return %c0_i32, %c0_i32_0 : i32, i32
  }
  func.func @transform_11(%arg0: i32) -> (i32, i32) {
    %c0_i32 = arith.constant 0 : i32
    %c0_i32_0 = arith.constant 0 : i32
    return %arg0, %c0_i32 : i32, i32
  }
  func.func @transform_12(%arg0: i32) -> (i32, i32) {
    %c0_i32 = arith.constant 0 : i32
    %c0_i32_0 = arith.constant 0 : i32
    return %arg0, %c0_i32 : i32, i32
  }
  func.func @transform_13(%arg0: i32) -> (i32, i32) {
    %c0_i32 = arith.constant 0 : i32
    %c0_i32_0 = arith.constant 0 : i32
    return %arg0, %c0_i32 : i32, i32
  }
  func.func @transform_14(%arg0: i32) -> (i32, i32) {
    %c0_i32 = arith.constant 0 : i32
    %c0_i32_0 = arith.constant 0 : i32
    return %arg0, %c0_i32 : i32, i32
  }
}

</mosaic_0001>

<bundles_post_ra>
// kernel: tclnet_forward.1
= control target key start
LH: loop header
LB: loop body
LE: loop exit
PB: predicated region body
PF: predicated region fallthrough
CT: control target
= control target key end

     0   :  { %20 = vsyncpa [#allocation3], 0  ;;  %s2210_s0 = inlined_call_operand.vmem [shape: f32[8,4,256], index: 0, kind: input, shape index: {}]   ;;  %s2211_s1 = inlined_call_operand.vmem [shape: bf16[4,128], index: 1, kind: input, shape index: {}]   ;;  %s2212_s2 = inlined_call_operand.vmem [shape: f32[1,128], index: 2, kind: input, shape index: {}]   ;;  %s2213_s3 = inlined_call_operand.hbm [shape: bf16[128,256], index: 3, kind: input, shape index: {}]   ;;  %s2214_s4 = inlined_call_operand.vmem [shape: f32[1,256], index: 4, kind: input, shape index: {}]   ;;  %s2215_s5 = inlined_call_operand.vmem [shape: bf16[256,512], index: 5, kind: input, shape index: {}]   ;;  %s2216_s6 = inlined_call_operand.vmem [shape: f32[1,512], index: 6, kind: input, shape index: {}]   ;;  %s2217_s7 = inlined_call_operand.hbm [shape: bf16[256,128], index: 7, kind: input, shape index: {}]   ;;  %s2218_s8 = inlined_call_operand.vmem [shape: f32[1,128], index: 8, kind: input, shape index: {}]   ;;  %s2219_s9 = inlined_call_operand.hbm [shape: bf16[256,128], index: 9, kind: input, shape index: {}]   ;;  %s2220_s10 = inlined_call_operand.vmem [shape: f32[1,128], index: 10, kind: input, shape index: {}]   ;;  %s2221_s11 = inlined_call_operand.hbm [shape: f32[8,256], index: 11, kind: output, shape index: {0}]   ;;  %s2222_s12 = inlined_call_operand.hbm [shape: f32[8,128], index: 12, kind: output, shape index: {1}]   ;;  %s2223_s13 = inlined_call_operand.hbm [shape: f32[8,128], index: 13, kind: output, shape index: {2}]   ;;  %s2224_s14 = inlined_call_operand.vmem [shape: f32[8,128], index: 14, kind: output, shape index: {3}]  }
   0x1   :  { %21 = vsyncpa [#allocation6], 0 }
   0x2   :  { %22 = vsyncpa [#allocation4], 0 }
   0x3   :  { %23 = vsyncpa [#allocation10], 0  ;;  %s1836_s29 = smov [#allocation5]  }
   0x4   :  { %s53_s30 = sshll.u32 %s1836_s29, 4  ;;  %s54_s30 = int_to_ptr.vmem [resolvable:$true] %s53_s30 }
   0x5   :  { %s1716_s15 = scalar_lea.vmem %s54_s30, 2048  ;;  %p1721_p1 = scmp.lt.s32.totalorder %s54_s30, %s54_s30 }
   0x6   :  { %p1717_p0 = scmp.ne.s32.totalorder %s54_s30, %s1716_s15  ;;  %p1722_p2 = scmp.lt.s32.totalorder %s1716_s15, %s1716_s15 }
   0x8   :  { %p1723_p3 = por %p1722_p2, %p1721_p1 }
   0xa   :  { %p1724_p4 = pnand %p1723_p3, %p1717_p0 }
   0xc   :  { %1727 = shalt.err (!%p1724_p4)
}
   0xd   :  { %s1837_s16 = smov 64   ;;  %s1838_s17 = smov 4  }
   0xe   :  { %59 = dma.hbm_to_vmem [thread:$0]  %s2217_s7, 2048, %s54_s30, [#allocation6], %s1837_s16, %s1837_s16, %s1838_s17  }
   0xf   :  { %s1839_s20 = smov [#allocation2]  }
  0x10   :  { %s35_s21 = sshll.u32 %s1839_s20, 4  ;;  %s36_s21 = int_to_ptr.vmem [resolvable:$true] %s35_s21 }
  0x11   :  { %s1736_s22 = scalar_lea.vmem %s36_s21, 2048  ;;  %p1741_p6 = scmp.lt.s32.totalorder %s36_s21, %s36_s21 }
  0x12   :  { %p1737_p5 = scmp.ne.s32.totalorder %s36_s21, %s1736_s22  ;;  %p1742_p7 = scmp.lt.s32.totalorder %s1736_s22, %s1736_s22 }
  0x14   :  { %p1743_p8 = por %p1742_p7, %p1741_p6 }
  0x16   :  { %p1744_p9 = pnand %p1743_p8, %p1737_p5 }
  0x18   :  { %1747 = shalt.err (!%p1744_p9)
}
  0x19   :  { %s1840_s23 = smov 128   ;;  %s1841_s24 = smov 8  }
  0x1a   :  { %41 = dma.hbm_to_vmem [thread:$0]  %s2213_s3, 2048, %s36_s21, [#allocation3], %s1840_s23, %s1840_s23, %s1841_s24  }
  0x1b   :  { %s1842_s27 = smov [#allocation7]  }
  0x1c   :  { %s67_s28 = sshll.u32 %s1842_s27, 4  ;;  %s68_s28 = int_to_ptr.vmem [resolvable:$true] %s67_s28 }
  0x1d   :  { %s1756_s7 = scalar_lea.vmem %s68_s28, 2048  ;;  %p1761_p11 = scmp.lt.s32.totalorder %s68_s28, %s68_s28 }
  0x1e   :  { %p1757_p10 = scmp.ne.s32.totalorder %s68_s28, %s1756_s7  ;;  %p1762_p12 = scmp.lt.s32.totalorder %s1756_s7, %s1756_s7 }
  0x20   :  { %p1763_p13 = por %p1762_p12, %p1761_p11 }
  0x22   :  { %p1764_p0 = pnand %p1763_p13, %p1757_p10 }
  0x24   :  { %1767 = shalt.err (!%p1764_p0)
}
  0x25   :  { %73 = dma.hbm_to_vmem [thread:$0]  %s2219_s9, 2048, %s68_s28, [#allocation6], %s1837_s16, %s1837_s16, %s1838_s17  }
  0x26   :  { %1828 = dma.done.wait [#allocation3], 2048  }
  0x27   :  { %1829 = vsyncadd [#allocation3], 4294965248 }
  0x28   :  { %1830 = dma.done.wait [#allocation6], 4096  }
  0x29   :  { %1831 = vsyncadd [#allocation6], 4294963200  ;;  %vm118_vm0 = vcmask 1043456   ;;  %v86_v0 = vld [vmem:[%s2210_s0] sm:$0xff]  ;;  %v88_v1 = vld [vmem:[%s2210_s0 + $0x10] sm:$0xff]  ;;  %vm244_vm1 = vcmask 1041408   ;;  %v191_v56 = vlaneseq }
  0x2a   :  { %v87_v2 = vld [vmem:[%s2210_s0 + $0x8] sm:$0xff]  ;;  %v102_v3 = vcombine.high %v86_v0, %v86_v0  ;;  %v119_v4 = vsel %vm118_vm0, %v86_v0, 0.0  ;;  %v104_v5 = vcombine.high %v88_v1, %v88_v1  ;;  %v129_v6 = vsel %vm118_vm0, %v88_v1, 0.0  ;;  %v89_v7 = vld [vmem:[%s2210_s0 + $0x18] sm:$0xff]  ;;  %v90_v8 = vld [vmem:[%s2210_s0 + $0x20] sm:$0xff]  ;;  %s1846_s18 = smov [#allocation9]  }
  0x2b   :  { %v91_v9 = vld [vmem:[%s2210_s0 + $0x28] sm:$0xff]  ;;  %v103_v10 = vcombine.high %v87_v2, %v87_v2  ;;  %v124_v11 = vsel %vm118_vm0, %v87_v2, 0.0  ;;  %v105_v12 = vcombine.high %v89_v7, %v89_v7  ;;  %v92_v13 = vld [vmem:[%s2210_s0 + $0x30] sm:$0xff]  ;;  %v93_v14 = vld [vmem:[%s2210_s0 + $0x38] sm:$0xff]  ;;  %v134_v17 = vsel %vm118_vm0, %v89_v7, 0.0  ;;  %s1328_s19 = sshll.u32 %s1846_s18, 4  ;;  %s1329_s19 = int_to_ptr.vmem [resolvable:$true] %s1328_s19 }
  0x2c   :  { %v120_v15 = vsel %vm118_vm0, %v102_v3, 0.0  ;;  %v130_v16 = vsel %vm118_vm0, %v104_v5, 0.0  ;;  %v106_v18 = vcombine.high %v90_v8, %v90_v8  ;;  %v107_v23 = vcombine.high %v91_v9, %v91_v9  ;;  %v167_v40 = vld [vmem:[%s2211_s1] sm:$0x3]  ;;  %v1548_v43 = vld [vmem:[#allocation2 + $0x74] ss:$8 sps:$4 sm:$0xff]   ;;  %p1773_p2 = scmp.lt.s32.totalorder %s1329_s19, %s1329_s19 }
  0x2d   :  { %v121_v19 = vadd.f32 %v120_v15, %v119_v4  ;;  %v131_v20 = vadd.f32 %v130_v16, %v129_v6  ;;  %v125_v21 = vsel %vm118_vm0, %v103_v10, 0.0  ;;  %v135_v22 = vsel %vm118_vm0, %v105_v12, 0.0  ;;  %v1550_v44 = vld [vmem:[#allocation2 + $0x70] ss:$8 sps:$4 sm:$0xff]   ;;  %v1551_v45 = vld [vmem:[#allocation2 + $0x64] ss:$8 sps:$4 sm:$0xff]   ;;  %398 = vmatprep.subr.bf16.mxu1 %v1548_v43 }
  0x2e   :  { %v126_v24 = vadd.f32 %v125_v21, %v124_v11  ;;  %v136_v25 = vadd.f32 %v135_v22, %v134_v17  ;;  %v139_v26 = vsel %vm118_vm0, %v90_v8, 0.0  ;;  %v140_v27 = vsel %vm118_vm0, %v106_v18, 0.0  ;;  %399 = vmatpush1.bf16.msra.mxu1 %v1550_v44  ;;  %v1553_v46 = vld [vmem:[#allocation2 + $0x60] ss:$8 sps:$4 sm:$0xff]   ;;  %v1554_v47 = vld [vmem:[#allocation2 + $0x54] ss:$8 sps:$4 sm:$0xff]  }
  0x2f   :  { %122 = vadd.xlane.f32.xlu0 %v121_v19  ;;  %132 = vadd.xlane.f32.xlu1 %v131_v20  ;;  %v144_v28 = vsel %vm118_vm0, %v91_v9, 0.0  ;;  %v145_v29 = vsel %vm118_vm0, %v107_v23, 0.0  ;;  %v108_v30 = vcombine.high %v92_v13, %v92_v13  ;;  %v109_v31 = vcombine.high %v93_v14, %v93_v14  ;;  %v1556_v48 = vld [vmem:[#allocation2 + $0x50] ss:$8 sps:$4 sm:$0xff]   ;;  %v1557_v49 = vld [vmem:[#allocation2 + $0x44] ss:$8 sps:$4 sm:$0xff]  }
  0x30   :  { %v141_v32 = vadd.f32 %v140_v27, %v139_v26  ;;  %v146_v33 = vadd.f32 %v145_v29, %v144_v28  ;;  %v149_v34 = vsel %vm118_vm0, %v92_v13, 0.0  ;;  %v154_v36 = vsel %vm118_vm0, %v93_v14, 0.0  ;;  %400 = vmatprep.subr.bf16.mxu1 %v1551_v45  ;;  %v1559_v50 = vld [vmem:[#allocation2 + $0x40] ss:$8 sps:$4 sm:$0xff]   ;;  %v1560_v51 = vld [vmem:[#allocation2 + $0x34] ss:$8 sps:$4 sm:$0xff]  }
  0x31   :  { %v150_v35 = vsel %vm118_vm0, %v108_v30, 0.0  ;;  %v155_v37 = vsel %vm118_vm0, %v109_v31, 0.0  ;;  %v1843_v41 = vmov 0.0   ;;  %v246_v42 = vsel %vm244_vm1, %v167_v40, 0  ;;  %v1562_v52 = vld [vmem:[#allocation2 + $0x30] ss:$8 sps:$4 sm:$0xff]  }
  0x32   :  { %v151_v38 = vadd.f32 %v150_v35, %v149_v34  ;;  %v156_v39 = vadd.f32 %v155_v37, %v154_v36  ;;  %1521 = vmatprep.subr.bf16.mxu0 %v1843_v41  ;;  %vm1844_vm2 = vmmov 0   ;;  %401 = vmatpush1.bf16.msra.mxu1 %v1553_v46  ;;  %v1563_v53 = vld [vmem:[#allocation2 + $0x24] ss:$8 sps:$4 sm:$0xff]   ;;  %v1565_v54 = vld [vmem:[#allocation2 + $0x20] ss:$8 sps:$4 sm:$0xff]   ;;  %v192_v57 = vand.u32 127, %v191_v56 }
  0x33   :  { %127 = vadd.xlane.f32.xlu0 %v126_v24  ;;  %137 = vadd.xlane.f32.xlu1 %v136_v25  ;;  %v1566_v55 = vld [vmem:[#allocation2 + $0x14] ss:$8 sps:$4 sm:$0xff]   ;;  %v1976_v58 = vshrl.u32 %v191_v56, 7  ;;  %vm225_vm3 = vcmask 1041409   ;;  %vm227_vm4 = vcmask 1042434   ;;  %vm229_vm5 = vcmask 1043459  }
  0x34   :  { %1522 = vmatpush3.bf16.msra.mxu0 %v246_v42  ;;  %1523 = vmatprep.mubr.msk.bf16.mxu0 %vm1844_vm2, %v1843_v41  ;;  %vm231_vm6 = vcmask 1044484   ;;  %vm233_vm7 = vcmask 1045509   ;;  %vm235_vm8 = vcmask 1046534   ;;  %vm237_vm9 = vcmask 1047559   ;;  %v1568_v36 = vld [vmem:[#allocation2 + $0x10] ss:$8 sps:$4 sm:$0xff]  }
  0x35   :  { %402 = vmatprep.subr.bf16.mxu1 %v1554_v47  ;;  %v195_v63 = vsub.s32 %v192_v57, %v1976_v58  ;;  %vm240_vm10 = vcmask 31744   ;;  %v1569_v37 = vld [vmem:[#allocation2 + $0x4] ss:$8 sps:$4 sm:$0xff]   ;;  %v1572_v40 = vld [vmem:[%s2215_s5 + $0xe0] ss:$16 sps:$4 sm:$0xff]   ;;  %s1847_s20 = smov [#allocation8]  }
  0x36   :  { %403 = vmatpush1.bf16.msra.mxu1 %v1556_v48  ;;  %v1574_v41 = vld [vmem:[%s2215_s5 + $0xe4] ss:$16 sps:$4 sm:$0xff]   ;;  %v1577_v42 = vld [vmem:[%s2215_s5 + $0xec] ss:$16 sps:$4 sm:$0xff]   ;;  %v1578_v44 = vld [vmem:[%s2215_s5 + $0xc0] ss:$16 sps:$4 sm:$0xff]  }
  0x37   :  { %142 = vadd.xlane.f32.xlu0 %v141_v32  ;;  %147 = vadd.xlane.f32.xlu1 %v146_v33  ;;  %v1580_v43 = vld [vmem:[%s2215_s5 + $0xc4] ss:$16 sps:$4 sm:$0xff]   ;;  %v1584_v46 = vld [vmem:[%s2215_s5 + $0xa0] ss:$16 sps:$4 sm:$0xff]   ;;  %s1318_s21 = sshll.u32 %s1847_s20, 4  ;;  %s1768_s9 = scalar_lea.vmem %s1329_s19, 128  ;;  %s1319_s21 = int_to_ptr.vmem [resolvable:$true] %s1318_s21 }
  0x38   :  { %404 = vmatprep.subr.bf16.mxu1 %v1557_v49  ;;  %851 = vmatprep.subr.bf16.mxu0 %v1574_v41  ;;  %v1586_v45 = vld [vmem:[%s2215_s5 + $0xa4] ss:$16 sps:$4 sm:$0xff]   ;;  %v1590_v48 = vld [vmem:[%s2215_s5 + $0x80] ss:$16 sps:$4 sm:$0xff]   ;;  %p1769_p1 = scmp.ne.s32.totalorder %s1329_s19, %s1768_s9  ;;  %p1774_p3 = scmp.lt.s32.totalorder %s1768_s9, %s1768_s9 }
  0x39   :  { %v1592_v47 = vld [vmem:[%s2215_s5 + $0x84] ss:$16 sps:$4 sm:$0xff]   ;;  %v1614_v56 = vld [vmem:[%s2215_s5] ss:$16 sps:$4 sm:$0xff]  }
  0x3a   :  { %405 = vmatpush1.bf16.msra.mxu1 %v1559_v50  ;;  %v1598_v49 = vld [vmem:[%s2215_s5 + $0x64] ss:$16 sps:$4 sm:$0xff]   ;;  %v1596_v50 = vld [vmem:[%s2215_s5 + $0x60] ss:$16 sps:$4 sm:$0xff]   ;;  %p1775_p4 = por %p1774_p3, %p1773_p2 }
  0x3b   :  { %152 = vadd.xlane.f32.xlu0 %v151_v38  ;;  %157 = vadd.xlane.f32.xlu1 %v156_v39  ;;  %v1571_v38 = vld [vmem:[#allocation2] ss:$8 sps:$4 sm:$0xff]   ;;  %v1845_v39 = vmov 0   ;;  %v1622_v57 = vld [vmem:[%s2215_s5 + $0x1e4] ss:$16 sps:$4 sm:$0xff]  }
  0x3c   :  { %406 = vmatprep.subr.bf16.mxu1 %v1560_v51  ;;  %430 = vmatprep.mubr.bf16.mxu1 %v1845_v39  ;;  %v1604_v51 = vld [vmem:[%s2215_s5 + $0x44] ss:$16 sps:$4 sm:$0xff]   ;;  %v1655_v39 = vld [vmem:[%s2215_s5 + $0x14c] ss:$16 sps:$4 sm:$0xff]   ;;  %p1776_p5 = pnand %p1775_p4, %p1769_p1 }
  0x3d   :  { %v1658_v41 = vld [vmem:[%s2215_s5 + $0x124] ss:$16 sps:$4 sm:$0xff]  }
  0x3e   :  { %407 = vmatpush1.bf16.msra.mxu1 %v1562_v52  ;;  %v1602_v52 = vld [vmem:[%s2215_s5 + $0x40] ss:$16 sps:$4 sm:$0xff]  }
  0x3f   :  { %408 = vmatprep.subr.bf16.mxu1 %v1563_v53  ;;  %v1610_v53 = vld [vmem:[%s2215_s5 + $0x24] ss:$16 sps:$4 sm:$0xff]  }
  0x42   :  { %409 = vmatpush1.bf16.msra.mxu1 %v1565_v54  ;;  %v1608_v54 = vld [vmem:[%s2215_s5 + $0x20] ss:$16 sps:$4 sm:$0xff]  }
  0x43   :  { %410 = vmatprep.subr.bf16.mxu1 %v1566_v55  ;;  %v1616_v55 = vld [vmem:[%s2215_s5 + $0x4] ss:$16 sps:$4 sm:$0xff]  }
  0x46   :  { %411 = vmatpush1.bf16.msra.mxu1 %v1568_v36  ;;  %v1641_v36 = vld [vmem:[%s2215_s5 + $0x188] ss:$16 sps:$4 sm:$0xff]  }
  0x47   :  { %412 = vmatprep.subr.bf16.mxu1 %v1569_v37  ;;  %v1649_v37 = vld [vmem:[%s2215_s5 + $0x16c] ss:$16 sps:$4 sm:$0xff]  }
  0x4a   :  { %413 = vmatpush1.bf16.msra.mxu1 %v1571_v38  ;;  %v1647_v38 = vld [vmem:[%s2215_s5 + $0x168] ss:$16 sps:$4 sm:$0xff]  }
  0x4b   :  { %892 = vmatprep.subr.bf16.mxu1 %v1577_v42  ;;  %v1661_v42 = vld [vmem:[%s2215_s5 + $0x12c] ss:$16 sps:$4 sm:$0xff]  }
  0xb8   :  { %v123_v59 = vpop.xlane.xlu0 %122  ;;  %v133_v60 = vpop.xlane.xlu1 %132 }
  0xb9   :  { %v159_v61 = vpack.c.bf16 %v123_v59, %v123_v59  ;;  %v161_v62 = vpack.c.bf16 %v133_v60, %v133_v60  ;;  %v1620_v59 = vld [vmem:[%s2215_s5 + $0x1e0] ss:$16 sps:$4 sm:$0xff]   ;;  %v1628_v60 = vld [vmem:[%s2215_s5 + $0x1c4] ss:$16 sps:$4 sm:$0xff]  }
  0xbb   :  { %v183_v0 = vunpack.c.l.b16 %v159_v61  ;;  %v185_v5 = vunpack.c.l.b16 %v161_v62  ;;  %v1626_v61 = vld [vmem:[%s2215_s5 + $0x1c0] ss:$16 sps:$4 sm:$0xff]   ;;  %v1634_v62 = vld [vmem:[%s2215_s5 + $0x1a4] ss:$16 sps:$4 sm:$0xff]  }
  0xbc   :  { %v128_v1 = vpop.xlane.xlu0 %127  ;;  %v138_v2 = vpop.xlane.xlu1 %137 }
  0xbd   :  { %v160_v3 = vpack.c.bf16 %v128_v1, %v128_v1  ;;  %v162_v4 = vpack.c.bf16 %v138_v2, %v138_v2  ;;  %v196_v8 = vrot.slane %v183_v0, %v195_v63  ;;  %v204_v15 = vrot.slane %v185_v5, %v195_v63  ;;  %v1640_v0 = vld [vmem:[%s2215_s5 + $0x184] ss:$16 sps:$4 sm:$0xff]   ;;  %v1638_v1 = vld [vmem:[%s2215_s5 + $0x180] ss:$16 sps:$4 sm:$0xff]  }
  0xbe   :  { %v1646_v2 = vld [vmem:[%s2215_s5 + $0x164] ss:$16 sps:$4 sm:$0xff]   ;;  %v1650_v5 = vld [vmem:[%s2215_s5 + $0x140] ss:$16 sps:$4 sm:$0xff]  }
  0xbf   :  { %v184_v6 = vunpack.c.l.b16 %v160_v3  ;;  %v186_v7 = vunpack.c.l.b16 %v162_v4  ;;  %v1644_v3 = vld [vmem:[%s2215_s5 + $0x160] ss:$16 sps:$4 sm:$0xff]   ;;  %v1652_v4 = vld [vmem:[%s2215_s5 + $0x144] ss:$16 sps:$4 sm:$0xff]  }
  0xc0   :  { %v143_v9 = vpop.xlane.xlu0 %142  ;;  %v148_v10 = vpop.xlane.xlu1 %147 }
  0xc1   :  { %v200_v11 = vrot.slane %v184_v6, %v195_v63  ;;  %v208_v12 = vrot.slane %v186_v7, %v195_v63  ;;  %v163_v13 = vpack.c.bf16 %v143_v9, %v143_v9  ;;  %v164_v14 = vpack.c.bf16 %v148_v10, %v148_v10  ;;  %v1359_v6 = vld [vmem:[%s2212_s2] ss:$0 sm:$0xff] }
  0xc3   :  { %v226_v16 = vsel %vm225_vm3, %v200_v11, %v196_v8  ;;  %v187_v17 = vunpack.c.l.b16 %v163_v13  ;;  %v188_v18 = vunpack.c.l.b16 %v164_v14  ;;  %v1583_v14 = vld [vmem:[%s2215_s5 + $0xcc] ss:$16 sps:$4 sm:$0xff]  }
  0xc4   :  { %v228_v19 = vsel %vm227_vm4, %v204_v15, %v226_v16  ;;  %v153_v20 = vpop.xlane.xlu0 %152  ;;  %v158_v21 = vpop.xlane.xlu1 %157  ;;  %v1581_v16 = vld [vmem:[%s2215_s5 + $0xc8] ss:$16 sps:$4 sm:$0xff]  }
  0xc5   :  { %v230_v22 = vsel %vm229_vm5, %v208_v12, %v228_v19  ;;  %v212_v23 = vrot.slane %v187_v17, %v195_v63  ;;  %v165_v24 = vpack.c.bf16 %v153_v20, %v153_v20  ;;  %v216_v25 = vrot.slane %v188_v18, %v195_v63  ;;  %v1575_v12 = vld [vmem:[%s2215_s5 + $0xe8] ss:$16 sps:$4 sm:$0xff]   ;;  %v1589_v17 = vld [vmem:[%s2215_s5 + $0xac] ss:$16 sps:$4 sm:$0xff]  }
  0xc6   :  { %v166_v26 = vpack.c.bf16 %v158_v21, %v158_v21  ;;  %v1587_v18 = vld [vmem:[%s2215_s5 + $0xa8] ss:$16 sps:$4 sm:$0xff]   ;;  %v1595_v19 = vld [vmem:[%s2215_s5 + $0x8c] ss:$16 sps:$4 sm:$0xff]  }
  0xc7   :  { %v232_v27 = vsel %vm231_vm6, %v212_v23, %v230_v22  ;;  %v189_v28 = vunpack.c.l.b16 %v165_v24  ;;  %v1593_v20 = vld [vmem:[%s2215_s5 + $0x88] ss:$16 sps:$4 sm:$0xff]   ;;  %v1601_v21 = vld [vmem:[%s2215_s5 + $0x6c] ss:$16 sps:$4 sm:$0xff]  }
  0xc8   :  { %v190_v29 = vunpack.c.l.b16 %v166_v26  ;;  %v234_v31 = vsel %vm233_vm7, %v216_v25, %v232_v27  ;;  %v1599_v22 = vld [vmem:[%s2215_s5 + $0x68] ss:$16 sps:$4 sm:$0xff]   ;;  %v1607_v23 = vld [vmem:[%s2215_s5 + $0x4c] ss:$16 sps:$4 sm:$0xff]  }
  0xc9   :  { %v220_v30 = vrot.slane %v189_v28, %v195_v63  ;;  %v1605_v24 = vld [vmem:[%s2215_s5 + $0x48] ss:$16 sps:$4 sm:$0xff]   ;;  %v1613_v25 = vld [vmem:[%s2215_s5 + $0x2c] ss:$16 sps:$4 sm:$0xff]  }
  0xca   :  { %v224_v32 = vrot.slane %v190_v29, %v195_v63  ;;  %v1632_v63 = vld [vmem:[%s2215_s5 + $0x1a0] ss:$16 sps:$4 sm:$0xff]   ;;  %v1611_v26 = vld [vmem:[%s2215_s5 + $0x28] ss:$16 sps:$4 sm:$0xff]   ;;  %v1619_v27 = vld [vmem:[%s2215_s5 + $0xc] ss:$16 sps:$4 sm:$0xff]  }
  0xcb   :  { %v236_v33 = vsel %vm235_vm8, %v220_v30, %v234_v31  ;;  %v1617_v28 = vld [vmem:[%s2215_s5 + $0x8] ss:$16 sps:$4 sm:$0xff]   ;;  %v1625_v29 = vld [vmem:[%s2215_s5 + $0x1ec] ss:$16 sps:$4 sm:$0xff]  }
  0xcc   :  { %v238_v34 = vsel %vm237_vm9, %v224_v32, %v236_v33  ;;  %v1623_v30 = vld [vmem:[%s2215_s5 + $0x1e8] ss:$16 sps:$4 sm:$0xff]   ;;  %v1631_v31 = vld [vmem:[%s2215_s5 + $0x1cc] ss:$16 sps:$4 sm:$0xff]  }
  0xcd   :  { %v239_v35 = vpack.c.b16 %v238_v34, %v238_v34  ;;  %v1629_v32 = vld [vmem:[%s2215_s5 + $0x1c8] ss:$16 sps:$4 sm:$0xff]   ;;  %v1637_v33 = vld [vmem:[%s2215_s5 + $0x1ac] ss:$16 sps:$4 sm:$0xff]  }
  0xce   :  { %v1635_v34 = vld [vmem:[%s2215_s5 + $0x1a8] ss:$16 sps:$4 sm:$0xff]  }
  0xcf   :  { %1524 = vmatmul.mubr.msk.bf16.vlgmr.msra.gmra.mxu0 %vm240_vm10, %v239_v35  ;;  %v1643_v35 = vld [vmem:[%s2215_s5 + $0x18c] ss:$16 sps:$4 sm:$0xff]  }
  0xd0   :  { %852 = vmatpush1.bf16.msra.mxu0 %v1572_v40  ;;  %v1653_v40 = vld [vmem:[%s2215_s5 + $0x148] ss:$16 sps:$4 sm:$0xff]  }
  0xd1   :  { %853 = vmatprep.subr.bf16.mxu0 %v1580_v43  ;;  %v1656_v43 = vld [vmem:[%s2215_s5 + $0x120] ss:$16 sps:$4 sm:$0xff]  }
  0xd4   :  { %854 = vmatpush1.bf16.msra.mxu0 %v1578_v44  ;;  %v1659_v44 = vld [vmem:[%s2215_s5 + $0x128] ss:$16 sps:$4 sm:$0xff]  }
  0xd5   :  { %855 = vmatprep.subr.bf16.mxu0 %v1586_v45  ;;  %v1664_v45 = vld [vmem:[%s2215_s5 + $0x104] ss:$16 sps:$4 sm:$0xff]  }
  0xd8   :  { %856 = vmatpush1.bf16.msra.mxu0 %v1584_v46  ;;  %v1667_v46 = vld [vmem:[%s2215_s5 + $0x10c] ss:$16 sps:$4 sm:$0xff]  }
  0xd9   :  { %857 = vmatprep.subr.bf16.mxu0 %v1592_v47  ;;  %v1662_v47 = vld [vmem:[%s2215_s5 + $0x100] ss:$16 sps:$4 sm:$0xff]  }
  0xdc   :  { %858 = vmatpush1.bf16.msra.mxu0 %v1590_v48  ;;  %v1665_v48 = vld [vmem:[%s2215_s5 + $0x108] ss:$16 sps:$4 sm:$0xff]  }
  0xdd   :  { %859 = vmatprep.subr.bf16.mxu0 %v1598_v49  ;;  %v1668_v49 = vld [vmem:[#allocation5 + $0x78] sm:$0xff]  }
  0xe0   :  { %860 = vmatpush1.bf16.msra.mxu0 %v1596_v50  ;;  %v1669_v50 = vld [vmem:[#allocation7 + $0x78] sm:$0xff]  }
  0xe1   :  { %861 = vmatprep.subr.bf16.mxu0 %v1604_v51  ;;  %v310_v51 = vsub.s32 0, %v1976_v58 }
  0xe4   :  { %862 = vmatpush1.bf16.msra.mxu0 %v1602_v52  ;;  %v306_v52 = vld [vmem:[%s2214_s4] sm:$0x3] }
  0xe5   :  { %863 = vmatprep.subr.bf16.mxu0 %v1610_v53  ;;  %v314_v53 = vsub.s32 1, %v1976_v58 }
  0xe8   :  { %864 = vmatpush1.bf16.msra.mxu0 %v1608_v54  ;;  %v311_v54 = vrot.slane %v306_v52, %v310_v51 }
  0xe9   :  { %865 = vmatprep.subr.bf16.mxu0 %v1616_v55  ;;  %v315_v55 = vrot.slane %v306_v52, %v314_v53 }
  0xec   :  { %866 = vmatpush1.bf16.msra.mxu0 %v1614_v56 }
  0xed   :  { %867 = vmatprep.subr.bf16.mxu0 %v1622_v57 }
  0xf0   :  { %868 = vmatpush2.bf16.msra.mxu0 %v1620_v59 }
  0xf1   :  { %869 = vmatprep.subr.bf16.mxu0 %v1628_v60 }
  0xf4   :  { %870 = vmatpush2.bf16.msra.mxu0 %v1626_v61 }
  0xf5   :  { %871 = vmatprep.subr.bf16.mxu0 %v1634_v62 }
  0xf8   :  { %872 = vmatpush2.bf16.msra.mxu0 %v1632_v63 }
  0xf9   :  { %873 = vmatprep.subr.bf16.mxu0 %v1640_v0 }
  0xfc   :  { %874 = vmatpush2.bf16.msra.mxu0 %v1638_v1 }
  0xfd   :  { %875 = vmatprep.subr.bf16.mxu0 %v1646_v2  ;;  %v1670_v2 = vld [vmem:[#allocation5 + $0x38] sm:$0xff]  }
 0x100   :  { %876 = vmatpush2.bf16.msra.mxu0 %v1644_v3  ;;  %v1671_v3 = vld [vmem:[#allocation7 + $0x38] sm:$0xff]  }
 0x101   :  { %877 = vmatprep.subr.bf16.mxu0 %v1652_v4 }
 0x104   :  { %878 = vmatpush2.bf16.msra.mxu0 %v1650_v5  ;;  %v1672_v5 = vld [vmem:[#allocation5 + $0x70] sm:$0xff]  }
 0x105   :  { %879 = vmatprep.subr.bf16.mxu0 %v1658_v41 }
 0x108   :  { %880 = vmatpush2.bf16.msra.mxu0 %v1656_v43 }
 0x109   :  { %881 = vmatprep.subr.bf16.mxu0 %v1664_v45 }
 0x10c   :  { %882 = vmatpush2.bf16.msra.mxu0 %v1662_v47 }
 0x10d   :  { %1477 = vmatprep.subr.bf16.mxu0 %v1668_v49 }
 0x18f   :  { %v282_v7 = vpop.f32.mrf.mxu0 }
 0x190   :  { %v283_v8 = vadd.f32 %v1359_v6, %v282_v7  ;;  %v1673_v6 = vld [vmem:[#allocation7 + $0x70] sm:$0xff]  }
 0x191   :  { %v1525_v9 = vpop.f32.mrf.mxu0  ;;  %v1674_v7 = vld [vmem:[#allocation5 + $0x30] sm:$0xff]  }
 0x192   :  { %v288_v10 = vmax.f32 %v283_v8, 0.0  ;;  %v1675_v8 = vld [vmem:[#allocation7 + $0x30] sm:$0xff]   ;;  %v1676_v9 = vld [vmem:[#allocation5 + $0x68] sm:$0xff]  }
 0x193   :  { %v285_v11 = vpop.f32.mrf.mxu0 }
 0x194   :  { %v289_v13 = vpack.c.bf16 %v288_v10, %v288_v10  ;;  %v1677_v10 = vld [vmem:[#allocation7 + $0x68] sm:$0xff]  }
 0x195   :  { %v1526_v15 = vpop.f32.mrf.mxu0  ;;  %v1678_v11 = vld [vmem:[#allocation5 + $0x28] sm:$0xff]  }
 0x196   :  { %431 = vmatmul.mubr.bf16.vlgmr.msra.gmra.mxu1 %v289_v13  ;;  %v1680_v13 = vld [vmem:[#allocation5 + $0x60] sm:$0xff]  }
 0x197   :  { %893 = vmatpush1.bf16.msra.mxu1 %v1575_v12  ;;  %v1679_v12 = vld [vmem:[#allocation7 + $0x28] sm:$0xff]   ;;  %v1682_v15 = vld [vmem:[#allocation5 + $0x20] sm:$0xff]  }
 0x198   :  { %894 = vmatprep.subr.bf16.mxu1 %v1583_v14  ;;  %v1681_v14 = vld [vmem:[#allocation7 + $0x60] sm:$0xff]  }
 0x19b   :  { %895 = vmatpush1.bf16.msra.mxu1 %v1581_v16  ;;  %v1683_v16 = vld [vmem:[#allocation7 + $0x20] sm:$0xff]  }
 0x19c   :  { %896 = vmatprep.subr.bf16.mxu1 %v1589_v17  ;;  %v1684_v17 = vld [vmem:[#allocation5 + $0x58] sm:$0xff]  }
 0x19f   :  { %897 = vmatpush1.bf16.msra.mxu1 %v1587_v18  ;;  %v1685_v18 = vld [vmem:[#allocation7 + $0x58] sm:$0xff]  }
 0x1a0   :  { %898 = vmatprep.subr.bf16.mxu1 %v1595_v19  ;;  %v1686_v19 = vld [vmem:[#allocation5 + $0x18] sm:$0xff]  }
 0x1a3   :  { %899 = vmatpush1.bf16.msra.mxu1 %v1593_v20  ;;  %v1687_v20 = vld [vmem:[#allocation7 + $0x18] sm:$0xff]  }
 0x1a4   :  { %900 = vmatprep.subr.bf16.mxu1 %v1601_v21  ;;  %v1688_v21 = vld [vmem:[#allocation5 + $0x50] sm:$0xff]  }
 0x1a7   :  { %901 = vmatpush1.bf16.msra.mxu1 %v1599_v22  ;;  %v1689_v22 = vld [vmem:[#allocation7 + $0x50] sm:$0xff]  }
 0x1a8   :  { %902 = vmatprep.subr.bf16.mxu1 %v1607_v23  ;;  %v1690_v23 = vld [vmem:[#allocation5 + $0x10] sm:$0xff]  }
 0x1ab   :  { %903 = vmatpush1.bf16.msra.mxu1 %v1605_v24  ;;  %v1691_v24 = vld [vmem:[#allocation7 + $0x10] sm:$0xff]  }
 0x1ac   :  { %904 = vmatprep.subr.bf16.mxu1 %v1613_v25  ;;  %v1692_v25 = vld [vmem:[#allocation5 + $0x48] sm:$0xff]  }
 0x1af   :  { %905 = vmatpush1.bf16.msra.mxu1 %v1611_v26  ;;  %v1693_v26 = vld [vmem:[#allocation7 + $0x48] sm:$0xff]  }
 0x1b0   :  { %906 = vmatprep.subr.bf16.mxu1 %v1619_v27  ;;  %v1694_v27 = vld [vmem:[#allocation5 + $0x8] sm:$0xff]  }
 0x1b3   :  { %907 = vmatpush1.bf16.msra.mxu1 %v1617_v28  ;;  %v1695_v28 = vld [vmem:[#allocation7 + $0x8] sm:$0xff]  }
 0x1b4   :  { %908 = vmatprep.subr.bf16.mxu1 %v1625_v29  ;;  %v1696_v29 = vld [vmem:[#allocation5 + $0x40] sm:$0xff]  }
 0x1b7   :  { %909 = vmatpush2.bf16.msra.mxu1 %v1623_v30  ;;  %v1697_v30 = vld [vmem:[#allocation7 + $0x40] sm:$0xff]  }
 0x1b8   :  { %910 = vmatprep.subr.bf16.mxu1 %v1631_v31  ;;  %v1698_v31 = vld [vmem:[#allocation5] sm:$0xff]  }
 0x1bb   :  { %911 = vmatpush2.bf16.msra.mxu1 %v1629_v32  ;;  %v1699_v32 = vld [vmem:[#allocation7] sm:$0xff]  }
 0x1bc   :  { %912 = vmatprep.subr.bf16.mxu1 %v1637_v33  ;;  %v521_v33 = vsub.s32 2, %v1976_v58 }
 0x1bf   :  { %913 = vmatpush2.bf16.msra.mxu1 %v1635_v34  ;;  %v509_v34 = vld [vmem:[%s2216_s6] sm:$0xf] }
 0x1c0   :  { %914 = vmatprep.subr.bf16.mxu1 %v1643_v35  ;;  %v525_v35 = vsub.s32 3, %v1976_v58 }
 0x1c3   :  { %915 = vmatpush2.bf16.msra.mxu1 %v1641_v36  ;;  %v514_v36 = vrot.slane %v509_v34, %v310_v51 }
 0x1c4   :  { %916 = vmatprep.subr.bf16.mxu1 %v1649_v37  ;;  %v522_v37 = vrot.slane %v509_v34, %v521_v33 }
 0x1c7   :  { %917 = vmatpush2.bf16.msra.mxu1 %v1647_v38  ;;  %v518_v38 = vrot.slane %v509_v34, %v314_v53 }
 0x1c8   :  { %918 = vmatprep.subr.bf16.mxu1 %v1655_v39  ;;  %v526_v39 = vrot.slane %v509_v34, %v525_v35 }
 0x1cb   :  { %919 = vmatpush2.bf16.msra.mxu1 %v1653_v40 }
 0x1cc   :  { %920 = vmatprep.subr.bf16.mxu1 %v1661_v42 }
 0x1cf   :  { %921 = vmatpush2.bf16.msra.mxu1 %v1659_v44 }
 0x1d0   :  { %922 = vmatprep.subr.bf16.mxu1 %v1667_v46 }
 0x1d3   :  { %923 = vmatpush2.bf16.msra.mxu1 %v1665_v48 }
 0x1d4   :  { %1499 = vmatprep.subr.bf16.mxu1 %v1669_v50 }
 0x256   :  { %v432_v56 = vpop.f32.mrf.mxu1 }
 0x257   :  { %v433_v57 = vadd.f32 %v432_v56, %v311_v54 }
 0x258   :  { %v434_v59 = vpop.f32.mrf.mxu1 }
 0x259   :  { %v439_v60 = vmax.f32 %v433_v57, 0.0  ;;  %v435_v61 = vadd.f32 %v434_v59, %v315_v55 }
 0x25a   :  { %v436_v62 = vpop.f32.mrf.mxu1 }
 0x25b   :  { %441 = vst [vmem:[#allocation8] sm:$0xff] %v439_v60  ;;  %v440_v63 = vmax.f32 %v435_v61, 0.0  ;;  %v443_v4 = vpack.c.bf16 %v439_v60, %v439_v60  ;;  %v1441_v62 = vld [vmem:[%s2218_s8] ss:$0 sm:$0xff] }
 0x25c   :  { %v437_v0 = vpop.f32.mrf.mxu1 }
 0x25d   :  { %442 = vst [vmem:[#allocation8 + $0x8] sm:$0xff] %v440_v63  ;;  %v444_v1 = vpack.c.bf16 %v440_v63, %v440_v63  ;;  %v1458_v0 = vld [vmem:[%s2220_s10] ss:$0 sm:$0xff] }
 0x25f   :  { %883 = vmatprep.mubr.bf16.mxu0 %v444_v1  ;;  %924 = vmatprep.mubr.bf16.mxu1 %v444_v1 }
 0x260   :  { %884 = vmatmul.mubr.bf16.vlgmr.msra.gmra.mxu0 %v443_v4  ;;  %925 = vmatmul.mubr.bf16.vlgmr.msra.gmra.mxu1 %v443_v4 }
 0x261   :  { %1478 = vmatpush3.bf16.msra.mxu0 %v1670_v2  ;;  %1500 = vmatpush3.bf16.msra.mxu1 %v1671_v3 }
 0x262   :  { %1479 = vmatprep.subr.bf16.mxu0 %v1672_v5  ;;  %1501 = vmatprep.subr.bf16.mxu1 %v1673_v6 }
 0x265   :  { %1480 = vmatpush3.bf16.msra.mxu0 %v1674_v7  ;;  %1502 = vmatpush3.bf16.msra.mxu1 %v1675_v8 }
 0x266   :  { %1481 = vmatprep.subr.bf16.mxu0 %v1676_v9  ;;  %1503 = vmatprep.subr.bf16.mxu1 %v1677_v10 }
 0x269   :  { %1482 = vmatpush3.bf16.msra.mxu0 %v1678_v11  ;;  %1504 = vmatpush3.bf16.msra.mxu1 %v1679_v12 }
 0x26a   :  { %1483 = vmatprep.subr.bf16.mxu0 %v1680_v13  ;;  %1505 = vmatprep.subr.bf16.mxu1 %v1681_v14 }
 0x26d   :  { %1484 = vmatpush3.bf16.msra.mxu0 %v1682_v15  ;;  %1506 = vmatpush3.bf16.msra.mxu1 %v1683_v16 }
 0x26e   :  { %1485 = vmatprep.subr.bf16.mxu0 %v1684_v17  ;;  %1507 = vmatprep.subr.bf16.mxu1 %v1685_v18 }
 0x271   :  { %1486 = vmatpush3.bf16.msra.mxu0 %v1686_v19  ;;  %1508 = vmatpush3.bf16.msra.mxu1 %v1687_v20 }
 0x272   :  { %1487 = vmatprep.subr.bf16.mxu0 %v1688_v21  ;;  %1509 = vmatprep.subr.bf16.mxu1 %v1689_v22 }
 0x275   :  { %1488 = vmatpush3.bf16.msra.mxu0 %v1690_v23  ;;  %1510 = vmatpush3.bf16.msra.mxu1 %v1691_v24 }
 0x276   :  { %1489 = vmatprep.subr.bf16.mxu0 %v1692_v25  ;;  %1511 = vmatprep.subr.bf16.mxu1 %v1693_v26 }
 0x279   :  { %1490 = vmatpush3.bf16.msra.mxu0 %v1694_v27  ;;  %1512 = vmatpush3.bf16.msra.mxu1 %v1695_v28 }
 0x27a   :  { %1491 = vmatprep.subr.bf16.mxu0 %v1696_v29  ;;  %1513 = vmatprep.subr.bf16.mxu1 %v1697_v30 }
 0x27d   :  { %1492 = vmatpush3.bf16.msra.mxu0 %v1698_v31  ;;  %1514 = vmatpush3.bf16.msra.mxu1 %v1699_v32 }
 0x320   :  { %v885_v40 = vpop.f32.mrf.mxu0  ;;  %v926_v41 = vpop.f32.mrf.mxu1 }
 0x321   :  { %v886_v42 = vadd.f32 %v885_v40, %v514_v36  ;;  %v927_v43 = vadd.f32 %v926_v41, %v522_v37 }
 0x322   :  { %v887_v44 = vpop.f32.mrf.mxu0  ;;  %v928_v45 = vpop.f32.mrf.mxu1 }
 0x323   :  { %v888_v46 = vadd.f32 %v887_v44, %v518_v38  ;;  %v929_v47 = vadd.f32 %v928_v45, %v526_v39  ;;  %v933_v48 = vmax.f32 %v886_v42, 0.0  ;;  %v935_v49 = vmax.f32 %v927_v43, 0.0 }
 0x324   :  { %v889_v50 = vpop.f32.mrf.mxu0  ;;  %v930_v52 = vpop.f32.mrf.mxu1 }
 0x325   :  { %v934_v54 = vmax.f32 %v888_v46, 0.0  ;;  %v936_v55 = vmax.f32 %v929_v47, 0.0  ;;  %v937_v53 = vpack.c.bf16 %v933_v48, %v933_v48  ;;  %v939_v59 = vpack.c.bf16 %v935_v49, %v935_v49 }
 0x326   :  { %v890_v51 = vpop.f32.mrf.mxu0  ;;  %v931_v56 = vpop.f32.mrf.mxu1 }
 0x327   :  { %v938_v57 = vpack.c.bf16 %v934_v54, %v934_v54  ;;  %v940_v58 = vpack.c.bf16 %v936_v55, %v936_v55 }
 0x329   :  { %1108 = vmatprep.mubr.bf16.mxu0 %v938_v57  ;;  %1294 = vmatprep.mubr.bf16.mxu1 %v940_v58 }
 0x32a   :  { %1109 = vmatmul.mubr.bf16.vlgmr.msra.gmra.mxu0 %v937_v53  ;;  %1295 = vmatmul.mubr.bf16.vlgmr.msra.gmra.mxu1 %v939_v59 }
 0x3ea   :  { %v1493_v60 = vpop.f32.mrf.mxu0  ;;  %v1515_v61 = vpop.f32.mrf.mxu1 }
 0x3ec   :  { %v1494_v63 = vpop.f32.mrf.mxu0  ;;  %v1516_v1 = vpop.f32.mrf.mxu1 }
 0x3ed   :  { %v1495_v2 = vadd.f32 %v1494_v63, %v1493_v60  ;;  %v1517_v3 = vadd.f32 %v1516_v1, %v1515_v61 }
 0x3ee   :  { %v1496_v4 = vpop.f32.mrf.mxu0  ;;  %v1518_v5 = vpop.f32.mrf.mxu1 }
 0x3ef   :  { %v1111_v6 = vadd.f32 %v1495_v2, %v1441_v62  ;;  %v1297_v7 = vadd.f32 %v1517_v3, %v1458_v0 }
 0x3f0   :  { %v1497_v8 = vpop.f32.mrf.mxu0  ;;  %v1519_v9 = vpop.f32.mrf.mxu1 }
 0x3f1   :  { %1116 = vst [vmem:[#allocation9] sm:$0xff] %v1111_v6  ;;  %v1302_v10 = vand.u32 2147483647, %v1297_v7  ;;  %1117 = vmax.xlane.f32.xlu0 %v1111_v6  ;;  %vm1308_vm11 = vcmp.ge.f32.partialorder %v1297_v7, 0.0 }
 0x3f3   :  { %v1303_v11 = vsub.f32 0.0, %v1302_v10 }
 0x3f5   :  { %v1304_v12 = vmul.f32 1.442695, %v1303_v11 }
 0x3f7   :  { %1700 = vpow2.f32 %v1304_v12 }
 0x404   :  { %v1701_v13 = vpop.eup %1700 }
 0x405   :  { %v1306_v14 = vadd.f32 1.0, %v1701_v13 }
 0x407   :  { %1702 = vrcp.f32 %v1306_v14 }
 0x414   :  { %v1703_v15 = vpop.eup %1702 }
 0x415   :  { %v1309_v16 = vmul.f32 %v1703_v15, %v1701_v13 }
 0x417   :  { %v1310_v17 = vsel %vm1308_vm11, %v1703_v15, %v1309_v16 }
 0x418   :  { %1311 = vst [vmem:[%s2224_s14] sm:$0xff] %v1310_v17 }
 0x47a   :  { %v1118_v18 = vpop.xlane.xlu0 %1117 }
 0x47b   :  { %v1119_v19 = vsub.f32 %v1111_v6, %v1118_v18 }
 0x47d   :  { %v1120_v20 = vmul.f32 1.442695, %v1119_v19 }
 0x47f   :  { %1704 = vpow2.f32 %v1120_v20 }
 0x48c   :  { %v1705_v21 = vpop.eup %1704 }
 0x48d   :  { %1122 = vadd.xlane.f32.xlu1 %v1705_v21 }
 0x48e   :  { %1779 = shalt.err (!%p1776_p5)
}
 0x48f   :  { %1331 = dma.vmem_to_hbm [thread:$0]  %s1329_s19, 128, %s2222_s12, [#allocation10]  }
 0x490   :  { %s1788_s17 = scalar_lea.vmem %s1319_s21, 256  ;;  %p1793_p7 = scmp.lt.s32.totalorder %s1319_s21, %s1319_s21 }
 0x491   :  { %p1789_p6 = scmp.ne.s32.totalorder %s1319_s21, %s1788_s17  ;;  %p1794_p8 = scmp.lt.s32.totalorder %s1788_s17, %s1788_s17 }
 0x493   :  { %p1795_p9 = por %p1794_p8, %p1793_p7 }
 0x495   :  { %p1796_p10 = pnand %p1795_p9, %p1789_p6 }
 0x497   :  { %1799 = shalt.err (!%p1796_p10)
}
 0x498   :  { %1321 = dma.vmem_to_hbm [thread:$0]  %s1319_s21, 256, %s2221_s11, [#allocation4]  }
 0x499   :  { %s1848_s24 = smov [#allocation11]  }
 0x49a   :  { %s1338_s25 = sshll.u32 %s1848_s24, 4  ;;  %s1339_s25 = int_to_ptr.vmem [resolvable:$true] %s1338_s25 }
 0x49b   :  { %s1808_s12 = scalar_lea.vmem %s1339_s25, 128  ;;  %p1813_p12 = scmp.lt.s32.totalorder %s1339_s25, %s1339_s25 }
 0x49c   :  { %p1809_p11 = scmp.ne.s32.totalorder %s1339_s25, %s1808_s12  ;;  %p1814_p13 = scmp.lt.s32.totalorder %s1808_s12, %s1808_s12 }
 0x49e   :  { %p1815_p0 = por %p1814_p13, %p1813_p12 }
 0x4a0   :  { %p1816_p1 = pnand %p1815_p0, %p1809_p11 }
 0x516   :  { %v1123_v22 = vpop.xlane.xlu1 %1122 }
 0x517   :  { %1706 = vrcp.f32 %v1123_v22 }
 0x524   :  { %v1707_v23 = vpop.eup %1706 }
 0x525   :  { %v1125_v24 = vmul.f32 %v1707_v23, %v1705_v21 }
 0x527   :  { %1126 = vst [vmem:[#allocation11] sm:$0xff] %v1125_v24 }
 0x528   :  { %1819 = shalt.err (!%p1816_p1)
}
 0x529   :  { %1341 = dma.vmem_to_hbm [thread:$0]  %s1339_s25, 128, %s2223_s13, [#allocation10]  }
 0x52a   :  { %1832 = dma.done.wait [#allocation4], 256  }
 0x52b   :  { %1833 = vsyncadd [#allocation4], 4294967040 }
 0x52c   :  { %1834 = dma.done.wait [#allocation10], 256  }
 0x52d   :  { %1835 = vsyncadd [#allocation10], 4294967040 }
 0x52e   :  { %1355 = vsyncpa [#allocation3], 1 }
 0x52f   :  { %1356 = vsyncpa [#allocation6], 1 }
 0x530   :  { %1357 = vsyncpa [#allocation4], 1 }
 0x531   :  { %1358 = vsyncpa [#allocation10], 1 }

</bundles_post_ra>
